<compile_context>
chip_gen: v6e
topology: v6e:2x2x1
jax: 0.10.0
libtpu: 0.0.40
codegen_flags: <defaults>
</compile_context>

<pallas_src>
import functools

import jax
import jax.numpy as jnp
from jax.experimental import pallas as pl
from jax.experimental.pallas import tpu as pltpu

_LANE = 128


def _round_up(x, m):
    return ((x + m - 1) // m) * m


def _cdiv(a, b):
    return (a + b - 1) // b


def dueling_q_kernel(x_ref,
                     w1_ref, b1_ref, w2_ref, b2_ref,
                     wh1_ref, bh1_ref, wh2_ref, bh2_ref,
                     out_ref,
                     *, fuse_combine, valid_b, n_act):
    """One batch tile, feature-major: state (S, TB) -> [V|A] slab (or Q) (rows, TB)."""
    cd = w1_ref.dtype  # MXU operand dtype (bf16 default); accumulation is f32.

    x = x_ref[...].astype(cd)                 # f32 state cast in-kernel (cheap VPU op)

    # features: Linear -> ReLU -> Linear    (all intermediates (out, TB): lane-dense)
    h1 = jnp.dot(w1_ref[...], x, preferred_element_type=jnp.float32) + b1_ref[...]
    h1 = jnp.maximum(h1, 0.0)
    feat = jnp.dot(w2_ref[...], h1.astype(cd),
                   preferred_element_type=jnp.float32) + b2_ref[...]

    # fused value+advantage heads:
    #   hidden layer: wh1 = [wv1 ; wa1] (out-major)  -> relu gives [v_hidden ; a_hidden]
    #   output layer: wh2 = blockdiag(wv2, wa2)      -> rows = [V ; A]
    h = jnp.dot(wh1_ref[...], feat.astype(cd),
                preferred_element_type=jnp.float32) + bh1_ref[...]
    h = jnp.maximum(h, 0.0)
    va = jnp.dot(wh2_ref[...], h.astype(cd),
                 preferred_element_type=jnp.float32) + bh2_ref[...]    # (1+A, TB)

    if fuse_combine:
        # Single-tile case: fold the GLOBAL advantage mean (over batch AND
        # actions, exactly like the PyTorch `advantages.mean()`) and the
        # V + (A - mean) combine into the kernel.  Padded batch columns are
        # excluded from the sum and the divisor; their garbage outputs are
        # sliced off in the wrapper.
        v = va[0:1, :]
        adv = va[1:, :]
        tb = adv.shape[1]
        if valid_b == tb:
            s = jnp.sum(adv)
        else:
            col = jax.lax.broadcasted_iota(jnp.int32, adv.shape, 1)
            s = jnp.sum(jnp.where(col < valid_b, adv, 0.0))
        mean = s / (valid_b * n_act)
        out_ref[...] = (v + (adv - mean)).astype(out_ref.dtype)        # (A, TB)
    else:
        out_ref[...] = va.astype(out_ref.dtype)                        # (1+A, TB)


def prepare_fused_params(params, compute_dtype=jnp.bfloat16):
    """Fuse the V/A heads, transpose to feature-major (out, in), cast weights.

    Call ONCE per parameter update and reuse the result for every forward
    (hoisted out of the per-call path).  Biases stay f32 — they are added to
    the f32 accumulators inside the kernel.
    """
    f3 = params["wv1"].shape[1]
    a = params["wa2"].shape[1]
    wh1 = jnp.concatenate([params["wv1"].T, params["wa1"].T], axis=0)   # (2F3, F2)
    bh1 = jnp.concatenate([params["bv1"].T, params["ba1"].T], axis=0)   # (2F3, 1)
    wh2 = jnp.zeros((1 + a, 2 * f3), jnp.float32)                       # (1+A, 2F3)
    wh2 = wh2.at[:1, :f3].set(params["wv2"].T)
    wh2 = wh2.at[1:, f3:].set(params["wa2"].T)
    bh2 = jnp.concatenate([params["bv2"].T, params["ba2"].T], axis=0)   # (1+A, 1)
    cd = compute_dtype
    return dict(
        w1=params["w1"].T.astype(cd), b1=params["b1"].T.astype(jnp.float32),
        w2=params["w2"].T.astype(cd), b2=params["b2"].T.astype(jnp.float32),
        wh1=wh1.astype(cd), bh1=bh1.astype(jnp.float32),
        wh2=wh2.astype(cd), bh2=bh2.astype(jnp.float32),
    )


def _choose_tiling(B, block_b):
    """Lane-aligned batch tiles with minimal padding; >=2 tiles whenever B
    allows it so the "parallel" grid axis can use both v7x TensorCores."""
    block_b = max(_round_up(block_b, _LANE), _LANE)
    if B <= _LANE:
        return _LANE, 1
    n_tiles = max(2, _cdiv(B, block_b))
    tb = _round_up(_cdiv(B, n_tiles), _LANE)
    n_tiles = _cdiv(B, tb)
    return tb, n_tiles


def dueling_q_forward(state, fused_params, *, block_b=2048):
    """state: (B, state_size) f32.  fused_params: output of prepare_fused_params."""
    B, S = state.shape
    fp = fused_params
    n_act = fp["wh2"].shape[0] - 1

    tb, n_tiles = _choose_tiling(B, block_b)
    bp = tb * n_tiles
    fuse_combine = (n_tiles == 1)

    # Feature-major: batch on the lane axis.  State stays f32 (no wrapper-side
    # bf16 round-trip); the cast happens inside the kernel.
    x = state.T                                        # (S, B) f32
    if bp != B:
        x = jnp.pad(x, ((0, 0), (0, bp - B)))

    weight_args = (fp["w1"], fp["b1"], fp["w2"], fp["b2"],
                   fp["wh1"], fp["bh1"], fp["wh2"], fp["bh2"])

    def const_spec(arr):
        # Constant block index -> parameters are DMA'd once and stay resident
        # across all batch tiles.
        return pl.BlockSpec(arr.shape, lambda i: (0, 0))

    out_rows = n_act if fuse_combine else (1 + n_act)

    flops = 2 * bp * sum(int(fp[k].shape[0]) * int(fp[k].shape[1])
                         for k in ("w1", "w2", "wh1", "wh2"))
    bytes_accessed = (bp * S * x.dtype.itemsize + bp * out_rows * 4
                      + sum(int(w.size) * w.dtype.itemsize for w in weight_args))

    kernel = functools.partial(dueling_q_kernel,
                               fuse_combine=fuse_combine,
                               valid_b=B, n_act=n_act)

    out = pl.pallas_call(
        kernel,
        out_shape=jax.ShapeDtypeStruct((out_rows, bp), jnp.float32),
        grid=(n_tiles,),
        in_specs=[pl.BlockSpec((S, tb), lambda i: (0, i))]
                 + [const_spec(w) for w in weight_args],
        out_specs=pl.BlockSpec((out_rows, tb), lambda i: (0, i)),
        compiler_params=pltpu.CompilerParams(
            dimension_semantics=("parallel",)),
        cost_estimate=pl.CostEstimate(flops=flops, transcendentals=0,
                                      bytes_accessed=bytes_accessed),
    )(x, *weight_args)

    if fuse_combine:
        # Q already combined in-kernel; drop padded columns, back to (B, A).
        return out[:, :B].T

    v = out[0:1, :B]
    adv = out[1:, :B]
    # Global mean over the WHOLE (B, action) advantage tensor — couples samples
    # across tiles (exactly like the PyTorch `advantages.mean()`), so it lives
    # in this tiny XLA epilogue and the batch grid axis stays fully parallel.
    return (v + (adv - jnp.mean(adv))).T


def init_params(key, state_size, action_size,
                fc1_units=32, fc2_units=16, fc3_units=8):
    """Deterministic, PyTorch-Linear-style uniform init; weights stored (in, out)."""
    def linear(k, fan_in, fan_out):
        kw, kb = jax.random.split(k)
        bound = 1.0 / jnp.sqrt(fan_in)
        w = jax.random.uniform(kw, (fan_in, fan_out), jnp.float32, -bound, bound)
        b = jax.random.uniform(kb, (1, fan_out), jnp.float32, -bound, bound)
        return w, b

    keys = jax.random.split(key, 6)
    w1, b1 = linear(keys[0], state_size, fc1_units)
    w2, b2 = linear(keys[1], fc1_units, fc2_units)
    wv1, bv1 = linear(keys[2], fc2_units, fc3_units)
    wv2, bv2 = linear(keys[3], fc3_units, 1)
    wa1, ba1 = linear(keys[4], fc2_units, fc3_units)
    wa2, ba2 = linear(keys[5], fc3_units, action_size)
    return dict(w1=w1, b1=b1, w2=w2, b2=b2,
                wv1=wv1, bv1=bv1, wv2=wv2, bv2=bv2,
                wa1=wa1, ba1=ba1, wa2=wa2, ba2=ba2)


def reference_forward(state, p):
    """Pure-JAX f32 reference mirroring the PyTorch forward exactly."""
    relu = lambda z: jnp.maximum(z, 0.0)
    feat = relu(state @ p["w1"] + p["b1"]) @ p["w2"] + p["b2"]
    values = relu(feat @ p["wv1"] + p["bv1"]) @ p["wv2"] + p["bv2"]
    adv = relu(feat @ p["wa1"] + p["ba1"]) @ p["wa2"] + p["ba2"]
    return values + (adv - jnp.mean(adv))


if __name__ == "__main__":
    key = jax.random.PRNGKey(0)
    k_state, k_params = jax.random.split(key)

    batch = 2
    state_size = 8
    action_size = 4

    state = jax.random.normal(k_state, (batch, state_size), jnp.float32)
    params = init_params(k_params, state_size, action_size)

    q_ref = reference_forward(state, params)

    # f32 compute path (test-only; production is bf16): tight numerical check.
    fused_f32 = prepare_fused_params(params, jnp.float32)
    q_f32 = jax.block_until_ready(dueling_q_forward(state, fused_f32))
    assert q_f32.shape == (batch, action_size)
    assert jnp.allclose(q_f32, q_ref, atol=1e-5, rtol=1e-5), (q_f32, q_ref)

    # bf16 production path (params fused/cast ONCE, reused across calls).
    fused_bf16 = prepare_fused_params(params)
    q_bf16 = jax.block_until_ready(dueling_q_forward(state, fused_bf16))
    assert q_bf16.shape == (batch, action_size)
    assert jnp.allclose(q_bf16, q_ref, atol=5e-2, rtol=5e-2), (q_bf16, q_ref)

    # Also exercise the multi-tile (>=2 grid steps, "parallel" axis) path.
    big_state = jax.random.normal(k_state, (300, state_size), jnp.float32)
    q_big = jax.block_until_ready(
        dueling_q_forward(big_state, fused_f32, block_b=2048))
    q_big_ref = reference_forward(big_state, params)
    assert q_big.shape == (300, action_size)
    assert jnp.allclose(q_big, q_big_ref, atol=1e-4, rtol=1e-4)

    print("KERNEL_OK")
</pallas_src>

<mosaic_0001>
module attributes {stable_mosaic.version = 11 : i64} {
  func.func @dueling_q_kernel(%arg0: i32, %arg1: memref<8x128xf32, #tpu.memory_space<vmem>>, %arg2: memref<32x8xf32, #tpu.memory_space<vmem>>, %arg3: memref<32x1xf32, #tpu.memory_space<vmem>>, %arg4: memref<16x32xf32, #tpu.memory_space<vmem>>, %arg5: memref<16x1xf32, #tpu.memory_space<vmem>>, %arg6: memref<16x16xf32, #tpu.memory_space<vmem>>, %arg7: memref<16x1xf32, #tpu.memory_space<vmem>>, %arg8: memref<5x16xf32, #tpu.memory_space<vmem>>, %arg9: memref<5x1xf32, #tpu.memory_space<vmem>>, %arg10: memref<4x128xf32, #tpu.memory_space<vmem>>) attributes {dimension_semantics = [#tpu.dimension_semantics<parallel>], iteration_bounds = array<i64: 1>, scalar_prefetch = 0 : i64, scratch_operands = 0 : i64, tpu.core_type = #tpu.core_type<tc>, window_params = [{transform_indices = @transform_0, window_bounds = array<i64: 8, 128>}, {pipeline_mode = #tpu.pipeline_mode<synchronous>, transform_indices = @transform_1, window_bounds = array<i64: 32, 8>}, {pipeline_mode = #tpu.pipeline_mode<synchronous>, transform_indices = @transform_2, window_bounds = array<i64: 32, 1>}, {pipeline_mode = #tpu.pipeline_mode<synchronous>, transform_indices = @transform_3, window_bounds = array<i64: 16, 32>}, {pipeline_mode = #tpu.pipeline_mode<synchronous>, transform_indices = @transform_4, window_bounds = array<i64: 16, 1>}, {pipeline_mode = #tpu.pipeline_mode<synchronous>, transform_indices = @transform_5, window_bounds = array<i64: 16, 16>}, {pipeline_mode = #tpu.pipeline_mode<synchronous>, transform_indices = @transform_6, window_bounds = array<i64: 16, 1>}, {pipeline_mode = #tpu.pipeline_mode<synchronous>, transform_indices = @transform_7, window_bounds = array<i64: 5, 16>}, {pipeline_mode = #tpu.pipeline_mode<synchronous>, transform_indices = @transform_8, window_bounds = array<i64: 5, 1>}, {transform_indices = @transform_9, window_bounds = array<i64: 4, 128>}]} {
    %c0 = arith.constant 0 : index
    %c0_0 = arith.constant 0 : index
    %0 = vector.load %arg1[%c0, %c0_0] : memref<8x128xf32, #tpu.memory_space<vmem>>, vector<8x128xf32>
    %c0_1 = arith.constant 0 : index
    %c0_2 = arith.constant 0 : index
    %1 = vector.load %arg2[%c0_1, %c0_2] : memref<32x8xf32, #tpu.memory_space<vmem>>, vector<32x8xf32>
    %cst = arith.constant dense<0.000000e+00> : vector<32x128xf32>
    %2 = tpu.matmul %1, %0, %cst {dimension_numbers = #tpu.dot_dimension_numbers<[1], [0], [0], [1], [0, 0, 1, 1], [], []>} : vector<32x8xf32>, vector<8x128xf32>, vector<32x128xf32> -> vector<32x128xf32>
    %c0_3 = arith.constant 0 : index
    %c0_4 = arith.constant 0 : index
    %3 = vector.load %arg3[%c0_3, %c0_4] : memref<32x1xf32, #tpu.memory_space<vmem>>, vector<32x1xf32>
    %4 = vector.broadcast %3 : vector<32x1xf32> to vector<32x128xf32>
    %5 = arith.addf %2, %4 : vector<32x128xf32>
    %cst_5 = arith.constant 0.000000e+00 : f32
    %6 = vector.broadcast %cst_5 : f32 to vector<32x128xf32>
    %7 = arith.maximumf %5, %6 : vector<32x128xf32>
    %c0_6 = arith.constant 0 : index
    %c0_7 = arith.constant 0 : index
    %8 = vector.load %arg4[%c0_6, %c0_7] : memref<16x32xf32, #tpu.memory_space<vmem>>, vector<16x32xf32>
    %cst_8 = arith.constant dense<0.000000e+00> : vector<16x128xf32>
    %9 = tpu.matmul %8, %7, %cst_8 {dimension_numbers = #tpu.dot_dimension_numbers<[1], [0], [0], [1], [0, 0, 1, 1], [], []>} : vector<16x32xf32>, vector<32x128xf32>, vector<16x128xf32> -> vector<16x128xf32>
    %c0_9 = arith.constant 0 : index
    %c0_10 = arith.constant 0 : index
    %10 = vector.load %arg5[%c0_9, %c0_10] : memref<16x1xf32, #tpu.memory_space<vmem>>, vector<16x1xf32>
    %11 = vector.broadcast %10 : vector<16x1xf32> to vector<16x128xf32>
    %12 = arith.addf %9, %11 : vector<16x128xf32>
    %c0_11 = arith.constant 0 : index
    %c0_12 = arith.constant 0 : index
    %13 = vector.load %arg6[%c0_11, %c0_12] : memref<16x16xf32, #tpu.memory_space<vmem>>, vector<16x16xf32>
    %cst_13 = arith.constant dense<0.000000e+00> : vector<16x128xf32>
    %14 = tpu.matmul %13, %12, %cst_13 {dimension_numbers = #tpu.dot_dimension_numbers<[1], [0], [0], [1], [0, 0, 1, 1], [], []>} : vector<16x16xf32>, vector<16x128xf32>, vector<16x128xf32> -> vector<16x128xf32>
    %c0_14 = arith.constant 0 : index
    %c0_15 = arith.constant 0 : index
    %15 = vector.load %arg7[%c0_14, %c0_15] : memref<16x1xf32, #tpu.memory_space<vmem>>, vector<16x1xf32>
    %16 = vector.broadcast %15 : vector<16x1xf32> to vector<16x128xf32>
    %17 = arith.addf %14, %16 : vector<16x128xf32>
    %cst_16 = arith.constant 0.000000e+00 : f32
    %18 = vector.broadcast %cst_16 : f32 to vector<16x128xf32>
    %19 = arith.maximumf %17, %18 : vector<16x128xf32>
    %c0_17 = arith.constant 0 : index
    %c0_18 = arith.constant 0 : index
    %20 = vector.load %arg8[%c0_17, %c0_18] : memref<5x16xf32, #tpu.memory_space<vmem>>, vector<5x16xf32>
    %cst_19 = arith.constant dense<0.000000e+00> : vector<5x128xf32>
    %21 = tpu.matmul %20, %19, %cst_19 {dimension_numbers = #tpu.dot_dimension_numbers<[1], [0], [0], [1], [0, 0, 1, 1], [], []>} : vector<5x16xf32>, vector<16x128xf32>, vector<5x128xf32> -> vector<5x128xf32>
    %c0_20 = arith.constant 0 : index
    %c0_21 = arith.constant 0 : index
    %22 = vector.load %arg9[%c0_20, %c0_21] : memref<5x1xf32, #tpu.memory_space<vmem>>, vector<5x1xf32>
    %23 = vector.broadcast %22 : vector<5x1xf32> to vector<5x128xf32>
    %24 = arith.addf %21, %23 : vector<5x128xf32>
    %25 = vector.extract_strided_slice %24 {offsets = [0, 0], sizes = [1, 128], strides = [1, 1]} : vector<5x128xf32> to vector<1x128xf32>
    %26 = vector.extract_strided_slice %24 {offsets = [1, 0], sizes = [4, 128], strides = [1, 1]} : vector<5x128xf32> to vector<4x128xf32>
    %27 = tpu.iota {dimensions = array<i32: 1>} : vector<4x128xi32>
    %c2_i32 = arith.constant 2 : i32
    %28 = vector.broadcast %c2_i32 : i32 to vector<4x128xi32>
    %29 = arith.cmpi slt, %27, %28 : vector<4x128xi32>
    %cst_22 = arith.constant 0.000000e+00 : f32
    %30 = vector.broadcast %cst_22 : f32 to vector<4x128xf32>
    %31 = arith.select %29, %26, %30 : vector<4x128xi1>, vector<4x128xf32>
    %32 = vector.shape_cast %31 : vector<4x128xf32> to vector<1x4x128xf32>
    %cst_23 = arith.constant dense<0.000000e+00> : vector<1xf32>
    %33 = vector.multi_reduction <add>, %32, %cst_23 [1, 2] : vector<1x4x128xf32> to vector<1xf32>
    %34 = vector.shape_cast %33 : vector<1xf32> to vector<1x1x1xf32>
    %35 = vector.extract %34[0, 0, 0] : f32 from vector<1x1x1xf32>
    %cst_24 = arith.constant 8.000000e+00 : f32
    %36 = arith.divf %35, %cst_24 : f32
    %37 = vector.broadcast %36 : f32 to vector<4x128xf32>
    %38 = arith.subf %26, %37 : vector<4x128xf32>
    %39 = vector.broadcast %25 : vector<1x128xf32> to vector<4x128xf32>
    %40 = arith.addf %39, %38 : vector<4x128xf32>
    %c0_25 = arith.constant 0 : index
    %c0_26 = arith.constant 0 : index
    %41 = vector.load %arg10[%c0_25, %c0_26] : memref<4x128xf32, #tpu.memory_space<vmem>>, vector<4x128xf32>
    tpu.vector_store %arg10[%c0_25, %c0_26], %40 {strides = array<i32>} : memref<4x128xf32, #tpu.memory_space<vmem>>, vector<4x128xf32>,
    return
  }
  func.func @transform_0(%arg0: i32) -> (i32, i32) {
    %c0_i32 = arith.constant 0 : i32
    %c0_i32_0 = arith.constant 0 : i32
    return %c0_i32, %arg0 : i32, i32
  }
  func.func @transform_1(%arg0: i32) -> (i32, i32) {
    %c0_i32 = arith.constant 0 : i32
    %c0_i32_0 = arith.constant 0 : i32
    %c0_i32_1 = arith.constant 0 : i32
    return %c0_i32, %c0_i32_0 : i32, i32
  }
  func.func @transform_2(%arg0: i32) -> (i32, i32) {
    %c0_i32 = arith.constant 0 : i32
    %c0_i32_0 = arith.constant 0 : i32
    %c0_i32_1 = arith.constant 0 : i32
    return %c0_i32, %c0_i32_0 : i32, i32
  }
  func.func @transform_3(%arg0: i32) -> (i32, i32) {
    %c0_i32 = arith.constant 0 : i32
    %c0_i32_0 = arith.constant 0 : i32
    %c0_i32_1 = arith.constant 0 : i32
    return %c0_i32, %c0_i32_0 : i32, i32
  }
  func.func @transform_4(%arg0: i32) -> (i32, i32) {
    %c0_i32 = arith.constant 0 : i32
    %c0_i32_0 = arith.constant 0 : i32
    %c0_i32_1 = arith.constant 0 : i32
    return %c0_i32, %c0_i32_0 : i32, i32
  }
  func.func @transform_5(%arg0: i32) -> (i32, i32) {
    %c0_i32 = arith.constant 0 : i32
    %c0_i32_0 = arith.constant 0 : i32
    %c0_i32_1 = arith.constant 0 : i32
    return %c0_i32, %c0_i32_0 : i32, i32
  }
  func.func @transform_6(%arg0: i32) -> (i32, i32) {
    %c0_i32 = arith.constant 0 : i32
    %c0_i32_0 = arith.constant 0 : i32
    %c0_i32_1 = arith.constant 0 : i32
    return %c0_i32, %c0_i32_0 : i32, i32
  }
  func.func @transform_7(%arg0: i32) -> (i32, i32) {
    %c0_i32 = arith.constant 0 : i32
    %c0_i32_0 = arith.constant 0 : i32
    %c0_i32_1 = arith.constant 0 : i32
    return %c0_i32, %c0_i32_0 : i32, i32
  }
  func.func @transform_8(%arg0: i32) -> (i32, i32) {
    %c0_i32 = arith.constant 0 : i32
    %c0_i32_0 = arith.constant 0 : i32
    %c0_i32_1 = arith.constant 0 : i32
    return %c0_i32, %c0_i32_0 : i32, i32
  }
  func.func @transform_9(%arg0: i32) -> (i32, i32) {
    %c0_i32 = arith.constant 0 : i32
    %c0_i32_0 = arith.constant 0 : i32
    return %c0_i32, %arg0 : i32, i32
  }
}

</mosaic_0001>

<bundles_post_ra>
// kernel: tpu_custom_call.1
= control target key start
LH: loop header
LB: loop body
LE: loop exit
PB: predicated region body
PF: predicated region fallthrough
CT: control target
= control target key end

     0   :  { %vm62_vm0 = vcmask 64512   ;;  %v571_v5 = vmov 0   ;;  %s694_s0 = inlined_call_operand.vmem [shape: f32[8,128], index: 0, kind: input, shape index: {}]   ;;  %s695_s1 = inlined_call_operand.vmem [shape: f32[32,8], index: 1, kind: input, shape index: {}]   ;;  %s696_s2 = inlined_call_operand.vmem [shape: f32[32,1], index: 2, kind: input, shape index: {}]   ;;  %s697_s3 = inlined_call_operand.vmem [shape: f32[16,32], index: 3, kind: input, shape index: {}]   ;;  %s698_s4 = inlined_call_operand.vmem [shape: f32[16,1], index: 4, kind: input, shape index: {}]   ;;  %s699_s5 = inlined_call_operand.vmem [shape: f32[16,16], index: 5, kind: input, shape index: {}]   ;;  %s700_s6 = inlined_call_operand.vmem [shape: f32[16,1], index: 6, kind: input, shape index: {}]   ;;  %s701_s7 = inlined_call_operand.vmem [shape: f32[5,16], index: 7, kind: input, shape index: {}]   ;;  %s702_s8 = inlined_call_operand.vmem [shape: f32[5,1], index: 8, kind: input, shape index: {}]   ;;  %s703_s9 = inlined_call_operand.hbm [shape: f32[4,128], index: 9, kind: output, shape index: {}]  }
   0x1   :  { %v33_v0 = vld [vmem:[%s694_s0] sm:$0xff]  ;;  %v35_v2 = vld [vmem:[%s695_s1 + $0x8] sm:$0xff]  ;;  %v36_v3 = vld [vmem:[%s695_s1 + $0x10] sm:$0xff]  ;;  %547 = vset.pattern.permute.xlu0 %v571_v5  ;;  %548 = vset.pattern.permute.xlu1 %v571_v5 }
   0x2   :  { %v34_v1 = vld [vmem:[%s695_s1] sm:$0xff]  ;;  %508 = vmatprep.subr.mxu0 %v33_v0  ;;  %v41_v4 = vld [vmem:[%s696_s2 + $0x18] sm:$0xff]  ;;  %v39_v6 = vld [vmem:[%s696_s2 + $0x8] sm:$0xff] }
   0x3   :  { %510 = vmatprep.mubr.msk.f32.mxu0 %vm62_vm0, %v34_v1  ;;  %509 = vmatpush3.msra.mxu0 %v33_v0  ;;  %v37_v7 = vld [vmem:[%s695_s1 + $0x18] sm:$0xff]  ;;  %v40_v8 = vld [vmem:[%s696_s2 + $0x10] sm:$0xff] }
   0x4   :  { %511 = vmatmul.mubr.msk.f32.vlgmr.msra.gmra.mxu0 %vm62_vm0, %v35_v2  ;;  %59 = vperm.xlu0 %547, %v41_v4  }
   0x5   :  { %513 = vmatprep.mubr.msk.f32.mxu0 %vm62_vm0, %v36_v3 }
   0x6   :  { %14 = vsyncpa [#allocation3], 0  ;;  %49 = vperm.xlu1 %548, %v39_v6   ;;  %v38_v9 = vld [vmem:[%s696_s2] sm:$0xff]  ;;  %v167_v10 = vld [vmem:[%s698_s4 + $0x8] sm:$0xff]  ;;  %vm178_vm1 = vcmask 261120   ;;  %vm274_vm2 = vcmask 130048   ;;  %v438_v51 = vlaneseq }
   0x7   :  { %v166_v11 = vld [vmem:[%s698_s4] sm:$0xff]  ;;  %v263_v12 = vld [vmem:[%s700_s6 + $0x8] sm:$0xff]  ;;  %v572_v41 = vmov 0.0   ;;  %vm573_vm3 = vmmov 0   ;;  %vm445_vm5 = vcmask 1043456   ;;  %s574_s0 = smov [#allocation2]  }
   0x8   :  { %514 = vmatmul.mubr.msk.f32.gmra.mxu0 %vm62_vm0, %v37_v7  ;;  %54 = vperm.xlu0 %547, %v40_v8   ;;  %v262_v13 = vld [vmem:[%s700_s6] sm:$0xff]  ;;  %v165_v32 = vld [vmem:[%s697_s3 + $0x8] sm:$0xff]  ;;  %v439_v52 = vand.u32 127, %v438_v51  ;;  %v462_v3 = vshrl.u32 %v438_v51, 7  ;;  %s473_s19 = sshll.u32 %s574_s0, 4  ;;  %s474_s19 = int_to_ptr.vmem [resolvable:$true] %s473_s19 }
   0x9   :  { %v359_v14 = vld [vmem:[%s702_s8] sm:$0x1f]  ;;  %v261_v40 = vld [vmem:[%s699_s5 + $0x8] sm:$0xff]  ;;  %s549_s20 = scalar_lea.vmem %s474_s19, 64  ;;  %p554_p1 = scmp.lt.s32.totalorder %s474_s19, %s474_s19 }
   0xa   :  { %44 = vperm.xlu1 %548, %v38_v9   ;;  %v164_v15 = vld [vmem:[%s697_s3] sm:$0xff]  ;;  %vm440_vm4 = vcmp.lt.s32.totalorder %v439_v52, 2  ;;  %v463_v4 = vsub.s32 0, %v462_v3  ;;  %p550_p0 = scmp.ne.s32.totalorder %s474_s19, %s549_s20  ;;  %p555_p2 = scmp.lt.s32.totalorder %s549_s20, %s549_s20 }
   0xb   :  { %524 = vmatprep.mubr.msk.f32.mxu1 %vm178_vm1, %v164_v15  ;;  %v260_v33 = vld [vmem:[%s699_s5] sm:$0xff] }
   0xc   :  { %175 = vperm.xlu0 %547, %v167_v10   ;;  %531 = vmatprep.mubr.msk.f32.mxu0 %vm274_vm2, %v260_v33  ;;  %v358_v50 = vld [vmem:[%s701_s7] sm:$0x1f]  ;;  %p556_p3 = por %p555_p2, %p554_p1 }
   0xe   :  { %170 = vperm.xlu1 %548, %v166_v11   ;;  %p557_p4 = pnand %p556_p3, %p550_p0 }
  0x10   :  { %271 = vperm.xlu0 %547, %v263_v12  }
  0x12   :  { %266 = vperm.xlu1 %548, %v262_v13  }
  0x14   :  { %362 = vperm.xlu0 %547, %v359_v14  }
  0x7f   :  { %v60_v16 = vpop.permute.xlu0 %59 }
  0x81   :  { %v50_v18 = vpop.permute.xlu1 %49 }
  0x83   :  { %v55_v22 = vpop.permute.xlu0 %54 }
  0x85   :  { %v45_v27 = vpop.permute.xlu1 %44 }
  0x87   :  { %v176_v34 = vpop.permute.xlu0 %175 }
  0x89   :  { %v171_v37 = vpop.permute.xlu1 %170 }
  0x8b   :  { %v272_v42 = vpop.permute.xlu0 %271 }
  0x8d   :  { %v267_v45 = vpop.permute.xlu1 %266 }
  0x8f   :  { %v363_v53 = vpop.permute.xlu0 %362 }
  0xc4   :  { %v512_v17 = vpop.f32.mrf.mxu0 }
  0xc5   :  { %v147_v24 = vadd.f32 %v512_v17, %v50_v18 }
  0xc6   :  { %v141_v19 = vpop.f32.mrf.mxu0 }
  0xc7   :  { %v142_v28 = vadd.f32 %v141_v19, %v45_v27  ;;  %v161_v30 = vmax.f32 %v147_v24, 0.0 }
  0xc8   :  { %v515_v20 = vpop.f32.mrf.mxu0 }
  0xc9   :  { %v157_v21 = vadd.f32 %v515_v20, %v60_v16  ;;  %v160_v31 = vmax.f32 %v142_v28, 0.0 }
  0xca   :  { %v151_v23 = vpop.f32.mrf.mxu0 }
  0xcb   :  { %v163_v25 = vmax.f32 %v157_v21, 0.0  ;;  %v152_v26 = vadd.f32 %v151_v23, %v55_v22 }
  0xcd   :  { %v162_v29 = vmax.f32 %v152_v26, 0.0  ;;  %516 = vmatprep.subr.mxu1 %v163_v25 }
  0xce   :  { %517 = vmatpush3.msra.mxu1 %v163_v25 }
  0xcf   :  { %518 = vmatprep.subr.mxu1 %v162_v29 }
  0xd0   :  { %519 = vmatpush3.msra.mxu1 %v162_v29 }
  0xd1   :  { %520 = vmatprep.subr.mxu1 %v161_v30 }
  0xd2   :  { %521 = vmatpush3.msra.mxu1 %v161_v30 }
  0xd3   :  { %522 = vmatprep.subr.mxu1 %v160_v31 }
  0xd4   :  { %523 = vmatpush3.msra.mxu1 %v160_v31 }
  0xd5   :  { %525 = vmatmul.mubr.msk.f32.vlgmr.msra.gmra.mxu1 %vm178_vm1, %v165_v32  ;;  %534 = vmatprep.subr.mxu1 %v572_v41 }
  0xd6   :  { %538 = vmatprep.mubr.msk.f32.mxu1 %vm573_vm3, %v572_v41 }
 0x195   :  { %v526_v35 = vpop.f32.mrf.mxu1 }
 0x196   :  { %v257_v36 = vadd.f32 %v526_v35, %v176_v34 }
 0x197   :  { %v251_v38 = vpop.f32.mrf.mxu1 }
 0x198   :  { %v252_v39 = vadd.f32 %v251_v38, %v171_v37  ;;  %527 = vmatprep.subr.mxu0 %v257_v36 }
 0x199   :  { %528 = vmatpush3.msra.mxu0 %v257_v36 }
 0x19a   :  { %529 = vmatprep.subr.mxu0 %v252_v39 }
 0x19b   :  { %530 = vmatpush3.msra.mxu0 %v252_v39 }
 0x19c   :  { %532 = vmatmul.mubr.msk.f32.vlgmr.msra.gmra.mxu0 %vm274_vm2, %v261_v40 }
 0x25c   :  { %v533_v43 = vpop.f32.mrf.mxu0 }
 0x25d   :  { %v353_v44 = vadd.f32 %v533_v43, %v272_v42 }
 0x25e   :  { %v347_v46 = vpop.f32.mrf.mxu0 }
 0x25f   :  { %v357_v47 = vmax.f32 %v353_v44, 0.0  ;;  %v348_v48 = vadd.f32 %v347_v46, %v267_v45 }
 0x261   :  { %v356_v49 = vmax.f32 %v348_v48, 0.0  ;;  %535 = vmatpush3.msra.mxu1 %v357_v47 }
 0x262   :  { %536 = vmatprep.subr.mxu1 %v572_v41 }
 0x263   :  { %537 = vmatpush3.msra.mxu1 %v356_v49 }
 0x264   :  { %539 = vmatmul.mubr.msk.f32.vlgmr.msra.gmra.mxu1 %vm274_vm2, %v358_v50 }
 0x324   :  { %v434_v54 = vpop.f32.mrf.mxu1 }
 0x325   :  { %v435_v55 = vadd.f32 %v434_v54, %v363_v53 }
 0x326   :  { %v540_v56 = vpop.f32.mrf.mxu1 }
 0x327   :  { %v441_v57 = vsel %vm440_vm4, %v435_v55, 0.0  ;;  %v464_v7 = vrot.slane %v435_v55, %v463_v4 }
 0x328   :  { %v443_v58 = vrot.slane %v441_v57, 1 }
 0x32a   :  { %v446_v59 = vsel %vm445_vm5, %v443_v58, 0.0 }
 0x32b   :  { %447 = vadd.xlane.f32.xlu1 %v446_v59 }
 0x3b4   :  { %v448_v60 = vpop.xlane.xlu1 %447 }
 0x3b5   :  { %v449_v61 = vrot.slane %v448_v60, 4 }
 0x3b7   :  { %v450_v62 = vadd.f32 %v449_v61, %v448_v60 }
 0x3b9   :  { %v451_v63 = vrot.slane %v450_v62, 2 }
 0x3bb   :  { %v452_v0 = vadd.f32 %v451_v63, %v450_v62 }
 0x3bd   :  { %v453_v1 = vrot.slane %v452_v0, 1 }
 0x3bf   :  { %v454_v2 = vadd.f32 %v453_v1, %v452_v0 }
 0x3c1   :  { %541 = vpush %v454_v2 }
 0x3f2   :  { %s542_s5 = spop %541 }
 0x3f3   :  { %s458_s7 = smul.f32 0.125, %s542_s5 }
 0x3f5   :  { %v459_v5 = vstv %s458_s7 }
 0x3f6   :  { %v460_v6 = vsub.f32 %v435_v55, %v459_v5 }
 0x3f8   :  { %v465_v8 = vadd.f32 %v464_v7, %v460_v6 }
 0x3fa   :  { %466 = vst [vmem:[#allocation2 - $0x1] sm:$0x1e] %v465_v8 }
 0x3fb   :  { %560 = shalt.err (!%p557_p4)
}
 0x3fc   :  { %476 = dma.vmem_to_hbm [thread:$0]  %s474_s19, 64, %s703_s9, [#allocation3]  }
 0x3fd   :  { %569 = dma.done.wait [#allocation3], 64  }
 0x3fe   :  { %570 = vsyncadd [#allocation3], 4294967232 }
 0x3ff   :  { %480 = vsyncpa [#allocation3], 1 }

</bundles_post_ra>
